<compile_context>
chip_gen: v7x
topology: tpu7x:2x2x1
jax: 0.10.0
libtpu: 0.0.40
codegen_flags: <defaults>
</compile_context>

<pallas_src>
import functools

import jax
import jax.numpy as jnp
from jax.experimental import pallas as pl
from jax.experimental.pallas import tpu as pltpu

GAMMA = 2        # FocalLoss.__init__ default
TS_MAX = 512     # row-groups (of 128 samples) per grid step -> 65536 samples/step


def _round_up(x, m):
    return ((x + m - 1) // m) * m


def _focal_loss_kernel(a_ref, x_ref, t_ref, numer_ref, denom_ref, *,
                       num_classes, gamma):
    # a_ref     : (C,)          f32 per-class weights, resident in SMEM
    # x_ref     : (C, TS, 128)  logits (class = leading batch axis, lane-dense samples)
    # t_ref     : (TS, 128)     int8 targets (-1 marks padded samples)
    # numer_ref : (1, 8, 128)   f32 per-tile partial of  w[t]*focal(t)
    # denom_ref : (1, 8, 128)   f32 per-tile partial of  w[t]
    x = x_ref[...].astype(jnp.float32)          # (C, TS, 128)
    t = t_ref[...].astype(jnp.int32)            # (TS, 128)
    ts = x.shape[1]

    # log-softmax over the class (leading/batch) axis: pure vreg max/add ops.
    m = x[0]
    for c in range(1, num_classes):
        m = jnp.maximum(m, x[c])
    s = jnp.exp(x[0] - m)
    for c in range(1, num_classes):
        s = s + jnp.exp(x[c] - m)
    lse = m + jnp.log(s)                        # (TS, 128)

    # Target-class gather + per-class weight: unrolled compare/select chain on
    # (TS,128) operands only.  Padded samples (t == -1) match nothing -> w_t = 0.
    x_t = jnp.zeros_like(m)
    w_t = jnp.zeros_like(m)
    for c in range(num_classes):
        sel = t == c
        x_t = jnp.where(sel, x[c], x_t)
        w_t = jnp.where(sel, a_ref[c], w_t)     # scalar read from SMEM

    logpt = x_t - lse                           # log p_t
    pt = jnp.exp(logpt)
    q = 1.0 - pt
    fl = logpt
    for _ in range(gamma):                      # gamma = 2 -> q*q*logpt, no float pow
        fl = fl * q

    num = w_t * fl                              # 0 for padded samples
    den = w_t

    # Per-tile partial reduction to a single (8,128) vreg.  The reshape splits
    # the sublane axis on an (8,128)-aligned boundary -> no relayout; the sum is
    # plain vreg adds.
    numer_ref[0] = jnp.sum(num.reshape(ts // 8, 8, 128), axis=0)
    denom_ref[0] = jnp.sum(den.reshape(ts // 8, 8, 128), axis=0)


def focal_loss(inputs, targets, alpha, gamma=GAMMA):
    """inputs: (N, C) float logits, targets: (N,) int, alpha: (C,) float -> scalar f32."""
    gamma = int(gamma)
    assert gamma >= 0
    n, c = inputs.shape

    n_groups = pl.cdiv(n, 128)                       # groups of 128 samples
    ts = min(TS_MAX, _round_up(n_groups, 8))         # row-groups per grid step
    n_groups_pad = _round_up(n_groups, ts)
    n_pad = n_groups_pad * 128
    num_tiles = n_groups_pad // ts

    # Single fused pre-pass: transpose + zero-pad + bitcast-equivalent reshape to
    # the sublane-packed (C, N_pad/128, 128) layout.
    # TODO(synk): eliminate this pass entirely if logits can be produced in
    # (C, N) layout upstream.
    x_cn = jnp.pad(jnp.transpose(inputs), ((0, 0), (0, n_pad - n)))
    x3d = x_cn.reshape(c, n_groups_pad, 128)

    tgt_dtype = jnp.int8 if c <= 127 else jnp.int32
    t2d = jnp.pad(targets.astype(tgt_dtype), (0, n_pad - n),
                  constant_values=-1).reshape(n_groups_pad, 128)

    a_vec = jnp.asarray(alpha, jnp.float32).reshape(-1)

    cost = pl.CostEstimate(
        flops=int(n * (4 * c + 14)),
        transcendentals=int(n * (c + 2)),
        bytes_accessed=int(n * c * inputs.dtype.itemsize
                           + n * t2d.dtype.itemsize
                           + num_tiles * 8 * 128 * 4 * 2 + c * 4),
    )

    kernel = functools.partial(_focal_loss_kernel, num_classes=c, gamma=gamma)

    numer, denom = pl.pallas_call(
        kernel,
        out_shape=(
            jax.ShapeDtypeStruct((num_tiles, 8, 128), jnp.float32),
            jax.ShapeDtypeStruct((num_tiles, 8, 128), jnp.float32),
        ),
        grid=(num_tiles,),
        in_specs=[
            pl.BlockSpec(memory_space=pltpu.MemorySpace.SMEM),   # alpha (C,) scalars
            pl.BlockSpec((c, ts, 128), lambda i: (0, i, 0)),     # logits tile
            pl.BlockSpec((ts, 128), lambda i: (i, 0)),           # targets tile
        ],
        out_specs=(
            pl.BlockSpec((1, 8, 128), lambda i: (i, 0, 0)),      # numer partials
            pl.BlockSpec((1, 8, 128), lambda i: (i, 0, 0)),      # denom partials
        ),
        compiler_params=pltpu.CompilerParams(
            dimension_semantics=("parallel",),    # independent tiles -> both TCs on v7x
            vmem_limit_bytes=32 * 1024 * 1024,
        ),
        cost_estimate=cost,
    )(a_vec, x3d, t2d)

    # nll_loss(weight=alpha, reduction='mean'):
    #   loss = -sum_i w[t_i] * fl[i, t_i] / sum_i w[t_i]
    return -(jnp.sum(numer) / jnp.sum(denom))


if __name__ == "__main__":
    key = jax.random.PRNGKey(0)
    k1, k2 = jax.random.split(key)

    N, C = 8, 4  # class_num = 4
    inputs = jax.random.normal(k1, (N, C), dtype=jnp.float32)
    targets = jax.random.randint(k2, (N,), 0, C, dtype=jnp.int32)
    # alpha=None in the module -> torch.ones(class_num, 1) -> weight 1 per class
    alpha = jnp.ones((C,), dtype=jnp.float32)

    def ref_loss(x, t, a):
        logpt = jax.nn.log_softmax(x, axis=1)
        pt = jnp.exp(logpt)
        fl = (1.0 - pt) ** GAMMA * logpt
        picked = fl[jnp.arange(x.shape[0]), t]
        w = a[t]
        return -jnp.sum(w * picked) / jnp.sum(w)

    loss = focal_loss(inputs, targets, alpha)
    jax.block_until_ready(loss)
    ref = ref_loss(inputs, targets, alpha)
    assert jnp.allclose(loss, ref, rtol=1e-5, atol=1e-6), (loss, ref)

    # Second check with a padded, non-trivial sample count.
    k3, k4 = jax.random.split(k2)
    N2 = 300
    inputs2 = jax.random.normal(k3, (N2, C), dtype=jnp.float32)
    targets2 = jax.random.randint(k4, (N2,), 0, C, dtype=jnp.int32)
    loss2 = focal_loss(inputs2, targets2, alpha)
    jax.block_until_ready(loss2)
    ref2 = ref_loss(inputs2, targets2, alpha)
    assert jnp.allclose(loss2, ref2, rtol=1e-5, atol=1e-6), (loss2, ref2)

    print("KERNEL_OK")
</pallas_src>

<mosaic_0001>
module attributes {stable_mosaic.version = 11 : i64} {
  func.func @_focal_loss_kernel(%arg0: i32, %arg1: memref<4xf32, #tpu.memory_space<smem>>, %arg2: memref<4x8x128xf32, #tpu.memory_space<vmem>>, %arg3: memref<8x128xi8, #tpu.memory_space<vmem>>, %arg4: memref<1x8x128xf32, #tpu.memory_space<vmem>>, %arg5: memref<1x8x128xf32, #tpu.memory_space<vmem>>) attributes {dimension_semantics = [#tpu.dimension_semantics<parallel>], iteration_bounds = array<i64: 1>, scalar_prefetch = 0 : i64, scratch_operands = 0 : i64, tpu.core_type = #tpu.core_type<tc>, window_params = [{transform_indices = @transform_0, window_bounds = array<i64: 4>}, {transform_indices = @transform_1, window_bounds = array<i64: 4, 8, 128>}, {transform_indices = @transform_2, window_bounds = array<i64: 8, 128>}, {transform_indices = @transform_3, window_bounds = array<i64: 1, 8, 128>}, {transform_indices = @transform_4, window_bounds = array<i64: 1, 8, 128>}]} {
    %c0 = arith.constant 0 : index
    %c0_0 = arith.constant 0 : index
    %c0_1 = arith.constant 0 : index
    %0 = vector.load %arg2[%c0, %c0_0, %c0_1] : memref<4x8x128xf32, #tpu.memory_space<vmem>>, vector<4x8x128xf32>
    %c0_2 = arith.constant 0 : index
    %c0_3 = arith.constant 0 : index
    %1 = vector.load %arg3[%c0_2, %c0_3] : memref<8x128xi8, #tpu.memory_space<vmem>>, vector<8x128xi8>
    %2 = arith.extsi %1 : vector<8x128xi8> to vector<8x128xi32>
    %3 = vector.extract_strided_slice %0 {offsets = [0, 0, 0], sizes = [1, 8, 128], strides = [1, 1, 1]} : vector<4x8x128xf32> to vector<1x8x128xf32>
    %4 = vector.shape_cast %3 : vector<1x8x128xf32> to vector<8x128xf32>
    %5 = vector.extract_strided_slice %0 {offsets = [1, 0, 0], sizes = [1, 8, 128], strides = [1, 1, 1]} : vector<4x8x128xf32> to vector<1x8x128xf32>
    %6 = vector.shape_cast %5 : vector<1x8x128xf32> to vector<8x128xf32>
    %7 = arith.maximumf %4, %6 : vector<8x128xf32>
    %8 = vector.extract_strided_slice %0 {offsets = [2, 0, 0], sizes = [1, 8, 128], strides = [1, 1, 1]} : vector<4x8x128xf32> to vector<1x8x128xf32>
    %9 = vector.shape_cast %8 : vector<1x8x128xf32> to vector<8x128xf32>
    %10 = arith.maximumf %7, %9 : vector<8x128xf32>
    %11 = vector.extract_strided_slice %0 {offsets = [3, 0, 0], sizes = [1, 8, 128], strides = [1, 1, 1]} : vector<4x8x128xf32> to vector<1x8x128xf32>
    %12 = vector.shape_cast %11 : vector<1x8x128xf32> to vector<8x128xf32>
    %13 = arith.maximumf %10, %12 : vector<8x128xf32>
    %14 = vector.extract_strided_slice %0 {offsets = [0, 0, 0], sizes = [1, 8, 128], strides = [1, 1, 1]} : vector<4x8x128xf32> to vector<1x8x128xf32>
    %15 = vector.shape_cast %14 : vector<1x8x128xf32> to vector<8x128xf32>
    %16 = arith.subf %15, %13 : vector<8x128xf32>
    %17 = math.exp %16 : vector<8x128xf32>
    %18 = vector.extract_strided_slice %0 {offsets = [1, 0, 0], sizes = [1, 8, 128], strides = [1, 1, 1]} : vector<4x8x128xf32> to vector<1x8x128xf32>
    %19 = vector.shape_cast %18 : vector<1x8x128xf32> to vector<8x128xf32>
    %20 = arith.subf %19, %13 : vector<8x128xf32>
    %21 = math.exp %20 : vector<8x128xf32>
    %22 = arith.addf %17, %21 : vector<8x128xf32>
    %23 = vector.extract_strided_slice %0 {offsets = [2, 0, 0], sizes = [1, 8, 128], strides = [1, 1, 1]} : vector<4x8x128xf32> to vector<1x8x128xf32>
    %24 = vector.shape_cast %23 : vector<1x8x128xf32> to vector<8x128xf32>
    %25 = arith.subf %24, %13 : vector<8x128xf32>
    %26 = math.exp %25 : vector<8x128xf32>
    %27 = arith.addf %22, %26 : vector<8x128xf32>
    %28 = vector.extract_strided_slice %0 {offsets = [3, 0, 0], sizes = [1, 8, 128], strides = [1, 1, 1]} : vector<4x8x128xf32> to vector<1x8x128xf32>
    %29 = vector.shape_cast %28 : vector<1x8x128xf32> to vector<8x128xf32>
    %30 = arith.subf %29, %13 : vector<8x128xf32>
    %31 = math.exp %30 : vector<8x128xf32>
    %32 = arith.addf %27, %31 : vector<8x128xf32>
    %33 = math.log %32 : vector<8x128xf32>
    %34 = arith.addf %13, %33 : vector<8x128xf32>
    %cst = arith.constant 0.000000e+00 : f32
    %35 = vector.broadcast %cst : f32 to vector<8x128xf32>
    %cst_4 = arith.constant 0.000000e+00 : f32
    %36 = vector.broadcast %cst_4 : f32 to vector<8x128xf32>
    %c0_i32 = arith.constant 0 : i32
    %37 = vector.broadcast %c0_i32 : i32 to vector<8x128xi32>
    %38 = arith.cmpi eq, %2, %37 : vector<8x128xi32>
    %39 = vector.extract_strided_slice %0 {offsets = [0, 0, 0], sizes = [1, 8, 128], strides = [1, 1, 1]} : vector<4x8x128xf32> to vector<1x8x128xf32>
    %40 = vector.shape_cast %39 : vector<1x8x128xf32> to vector<8x128xf32>
    %41 = arith.select %38, %40, %35 : vector<8x128xi1>, vector<8x128xf32>
    %c0_5 = arith.constant 0 : index
    %42 = memref.load %arg1[%c0_5] : memref<4xf32, #tpu.memory_space<smem>>
    %43 = vector.broadcast %42 : f32 to vector<8x128xf32>
    %44 = arith.select %38, %43, %36 : vector<8x128xi1>, vector<8x128xf32>
    %c1_i32 = arith.constant 1 : i32
    %45 = vector.broadcast %c1_i32 : i32 to vector<8x128xi32>
    %46 = arith.cmpi eq, %2, %45 : vector<8x128xi32>
    %47 = vector.extract_strided_slice %0 {offsets = [1, 0, 0], sizes = [1, 8, 128], strides = [1, 1, 1]} : vector<4x8x128xf32> to vector<1x8x128xf32>
    %48 = vector.shape_cast %47 : vector<1x8x128xf32> to vector<8x128xf32>
    %49 = arith.select %46, %48, %41 : vector<8x128xi1>, vector<8x128xf32>
    %c1 = arith.constant 1 : index
    %50 = memref.load %arg1[%c1] : memref<4xf32, #tpu.memory_space<smem>>
    %51 = vector.broadcast %50 : f32 to vector<8x128xf32>
    %52 = arith.select %46, %51, %44 : vector<8x128xi1>, vector<8x128xf32>
    %c2_i32 = arith.constant 2 : i32
    %53 = vector.broadcast %c2_i32 : i32 to vector<8x128xi32>
    %54 = arith.cmpi eq, %2, %53 : vector<8x128xi32>
    %55 = vector.extract_strided_slice %0 {offsets = [2, 0, 0], sizes = [1, 8, 128], strides = [1, 1, 1]} : vector<4x8x128xf32> to vector<1x8x128xf32>
    %56 = vector.shape_cast %55 : vector<1x8x128xf32> to vector<8x128xf32>
    %57 = arith.select %54, %56, %49 : vector<8x128xi1>, vector<8x128xf32>
    %c2 = arith.constant 2 : index
    %58 = memref.load %arg1[%c2] : memref<4xf32, #tpu.memory_space<smem>>
    %59 = vector.broadcast %58 : f32 to vector<8x128xf32>
    %60 = arith.select %54, %59, %52 : vector<8x128xi1>, vector<8x128xf32>
    %c3_i32 = arith.constant 3 : i32
    %61 = vector.broadcast %c3_i32 : i32 to vector<8x128xi32>
    %62 = arith.cmpi eq, %2, %61 : vector<8x128xi32>
    %63 = vector.extract_strided_slice %0 {offsets = [3, 0, 0], sizes = [1, 8, 128], strides = [1, 1, 1]} : vector<4x8x128xf32> to vector<1x8x128xf32>
    %64 = vector.shape_cast %63 : vector<1x8x128xf32> to vector<8x128xf32>
    %65 = arith.select %62, %64, %57 : vector<8x128xi1>, vector<8x128xf32>
    %c3 = arith.constant 3 : index
    %66 = memref.load %arg1[%c3] : memref<4xf32, #tpu.memory_space<smem>>
    %67 = vector.broadcast %66 : f32 to vector<8x128xf32>
    %68 = arith.select %62, %67, %60 : vector<8x128xi1>, vector<8x128xf32>
    %69 = arith.subf %65, %34 : vector<8x128xf32>
    %70 = math.exp %69 : vector<8x128xf32>
    %cst_6 = arith.constant 1.000000e+00 : f32
    %71 = vector.broadcast %cst_6 : f32 to vector<8x128xf32>
    %72 = arith.subf %71, %70 : vector<8x128xf32>
    %73 = arith.mulf %69, %72 : vector<8x128xf32>
    %74 = arith.mulf %73, %72 : vector<8x128xf32>
    %75 = arith.mulf %68, %74 : vector<8x128xf32>
    %76 = vector.shape_cast %75 : vector<8x128xf32> to vector<1x8x128xf32>
    %cst_7 = arith.constant dense<0.000000e+00> : vector<8x128xf32>
    %77 = vector.multi_reduction <add>, %76, %cst_7 [0] : vector<1x8x128xf32> to vector<8x128xf32>
    %c0_8 = arith.constant 0 : index
    %c0_9 = arith.constant 0 : index
    %c0_10 = arith.constant 0 : index
    %78 = vector.load %arg4[%c0_8, %c0_9, %c0_10] : memref<1x8x128xf32, #tpu.memory_space<vmem>>, vector<1x8x128xf32>
    %79 = vector.shape_cast %78 : vector<1x8x128xf32> to vector<8x128xf32>
    %80 = vector.shape_cast %77 : vector<8x128xf32> to vector<1x8x128xf32>
    tpu.vector_store %arg4[%c0_8, %c0_9, %c0_10], %80 {strides = array<i32>} : memref<1x8x128xf32, #tpu.memory_space<vmem>>, vector<1x8x128xf32>,
    %81 = vector.shape_cast %68 : vector<8x128xf32> to vector<1x8x128xf32>
    %cst_11 = arith.constant dense<0.000000e+00> : vector<8x128xf32>
    %82 = vector.multi_reduction <add>, %81, %cst_11 [0] : vector<1x8x128xf32> to vector<8x128xf32>
    %c0_12 = arith.constant 0 : index
    %c0_13 = arith.constant 0 : index
    %c0_14 = arith.constant 0 : index
    %83 = vector.load %arg5[%c0_12, %c0_13, %c0_14] : memref<1x8x128xf32, #tpu.memory_space<vmem>>, vector<1x8x128xf32>
    %84 = vector.shape_cast %83 : vector<1x8x128xf32> to vector<8x128xf32>
    %85 = vector.shape_cast %82 : vector<8x128xf32> to vector<1x8x128xf32>
    tpu.vector_store %arg5[%c0_12, %c0_13, %c0_14], %85 {strides = array<i32>} : memref<1x8x128xf32, #tpu.memory_space<vmem>>, vector<1x8x128xf32>,
    return
  }
  func.func @transform_0(%arg0: i32) -> i32 {
    %c0_i32 = arith.constant 0 : i32
    %c0_i32_0 = arith.constant 0 : i32
    return %c0_i32 : i32
  }
  func.func @transform_1(%arg0: i32) -> (i32, i32, i32) {
    %c0_i32 = arith.constant 0 : i32
    %c0_i32_0 = arith.constant 0 : i32
    %c0_i32_1 = arith.constant 0 : i32
    return %c0_i32, %arg0, %c0_i32_0 : i32, i32, i32
  }
  func.func @transform_2(%arg0: i32) -> (i32, i32) {
    %c0_i32 = arith.constant 0 : i32
    %c0_i32_0 = arith.constant 0 : i32
    return %arg0, %c0_i32 : i32, i32
  }
  func.func @transform_3(%arg0: i32) -> (i32, i32, i32) {
    %c0_i32 = arith.constant 0 : i32
    %c0_i32_0 = arith.constant 0 : i32
    %c0_i32_1 = arith.constant 0 : i32
    return %arg0, %c0_i32, %c0_i32_0 : i32, i32, i32
  }
  func.func @transform_4(%arg0: i32) -> (i32, i32, i32) {
    %c0_i32 = arith.constant 0 : i32
    %c0_i32_0 = arith.constant 0 : i32
    %c0_i32_1 = arith.constant 0 : i32
    return %arg0, %c0_i32, %c0_i32_0 : i32, i32, i32
  }
}

</mosaic_0001>

<bundles_post_ra>
// kernel: tpu_custom_call.1
= control target key start
LH: loop header
LB: loop body
LE: loop exit
PB: predicated region body
PF: predicated region fallthrough
CT: control target
= control target key end

     0   :  { %10 = vsyncpa [#allocation5], 0  ;;  %s336_s0 = inlined_call_operand.hbm [shape: f32[4], index: 0, kind: input, shape index: {}]   ;;  %s337_s1 = inlined_call_operand.hbm [shape: f32[4,8,128], index: 1, kind: input, shape index: {}]   ;;  %s338_s2 = inlined_call_operand.vmem [shape: s8[8,128], index: 2, kind: input, shape index: {}]   ;;  %s339_s3 = inlined_call_operand.hbm [shape: f32[1,8,128], index: 3, kind: output, shape index: {0}]   ;;  %s340_s4 = inlined_call_operand.hbm [shape: f32[1,8,128], index: 4, kind: output, shape index: {1}]  }
   0x1   :  { %11 = vsyncpa [#allocation3], 0 }
   0x2   :  { %12 = vsyncpa [#allocation4], 0 }
   0x3   :  { %13 = vsyncpa [#allocation9], 0  ;;  %s152_s17 = scalar_lea.hbm %s336_s0, 16 }
   0x4   :  { %p153_p0 = scmp.ne.s32.totalorder %s336_s0, %s152_s17  ;;  %p156_p1 = scmp.lt.u32.totalorder %s152_s17, %s336_s0 }
   0x6   :  { %p158_p2 = pnand %p156_p1, %p153_p0 }
   0x8   :  { %161 = shalt.err (!%p158_p2)
}
   0x9   :  { %s236_s22 = smov [#allocation2]   ;;  %s237_s25 = smov [#allocation6]  }
   0xa   :  { %21 = dma.hbm_to_smem %s336_s0, 16, %s236_s22, [#allocation5]  }
   0xb   :  { %s27_s26 = sshll.u32 %s237_s25, 4  ;;  %s162_s29 = scalar_lea.hbm %s337_s1, 512  ;;  %s28_s26 = int_to_ptr.vmem [resolvable:$true] %s27_s26 }
   0xc   :  { %p163_p3 = scmp.ne.s32.totalorder %s337_s1, %s162_s29  ;;  %p166_p4 = scmp.lt.u32.totalorder %s162_s29, %s337_s1 }
   0xe   :  { %p168_p5 = pnand %p166_p4, %p163_p3 }
  0x10   :  { %171 = shalt.err (!%p168_p5)
}
  0x11   :  { %s172_s8 = scalar_lea.vmem %s28_s26, 512  ;;  %p177_p7 = scmp.lt.s32.totalorder %s28_s26, %s28_s26 }
  0x12   :  { %p173_p6 = scmp.ne.s32.totalorder %s28_s26, %s172_s8  ;;  %p178_p8 = scmp.lt.s32.totalorder %s172_s8, %s172_s8 }
  0x14   :  { %p179_p9 = por %p178_p8, %p177_p7 }
  0x16   :  { %p180_p10 = pnand %p179_p9, %p173_p6 }
  0x18   :  { %183 = shalt.err (!%p180_p10)
}
  0x19   :  { %s238_s0 = smov 128   ;;  %s239_s9 = smov 8  }
  0x1a   :  { %33 = dma.hbm_to_vmem [thread:$0]  %s337_s1, 512, %s28_s26, [#allocation3], %s238_s0, %s238_s0, %s239_s9  }
  0x1b   :  { %228 = dma.done.wait [#allocation5], 16  }
  0x1c   :  { %229 = vsyncadd [#allocation5], 4294967280 }
  0x1d   :  { %230 = dma.done.wait [#allocation3], 512  }
  0x1e   :  { %231 = vsyncadd [#allocation3], 4294966784 }
  0x1f   :  { %42 = sfence }
  0x20   :  { %v43_v0 = vld [vmem:[#allocation6] sm:$0xff]  ;;  %v291_v1 = vld [vmem:[#allocation6 + $0x8] sm:$0xff]  ;;  %v293_v2 = vld [vmem:[#allocation6 + $0x10] sm:$0xff]  ;;  %s72_s12 = sld [smem:[#allocation2]]  ;;  %s131_s15 = sld [smem:[#allocation2 + $0x1]] }
  0x21   :  { %v47_v3 = vld [vmem:[%s338_s2] sm:$0x3]  ;;  %v49_v4 = vmax.f32 %v43_v0, %v291_v1  ;;  %s132_s1 = sld [smem:[#allocation2 + $0x2]]  ;;  %s133_s16 = sld [smem:[#allocation2 + $0x3]] }
  0x22   :  { %v46_v5 = vld [vmem:[#allocation6 + $0x18] sm:$0xff]  ;;  %v48_v6 = vunpack.c.0.s8 %v47_v3  ;;  %s240_s2 = smov [#allocation8]  }
  0x23   :  { %v50_v7 = vmax.f32 %v49_v4, %v293_v2  ;;  %s117_s17 = sshll.u32 %s240_s2, 4  ;;  %s118_s17 = int_to_ptr.vmem [resolvable:$true] %s117_s17 }
  0x24   :  { %vm70_vm0 = vcmp.eq.s32.totalorder %v48_v6, 0  ;;  %vm75_vm1 = vcmp.eq.s32.totalorder %v48_v6, 1  ;;  %vm80_vm2 = vcmp.eq.s32.totalorder %v48_v6, 2  ;;  %vm85_vm3 = vcmp.eq.s32.totalorder %v48_v6, 3  ;;  %s184_s18 = scalar_lea.vmem %s118_s17, 128  ;;  %p189_p12 = scmp.lt.s32.totalorder %s118_s17, %s118_s17 }
  0x25   :  { %v51_v8 = vmax.f32 %v50_v7, %v46_v5  ;;  %p185_p11 = scmp.ne.s32.totalorder %s118_s17, %s184_s18  ;;  %p190_p13 = scmp.lt.s32.totalorder %s184_s18, %s184_s18 }
  0x26   :  { %v73_v9 = vstv %s72_s12  ;;  %v78_v15 = vstv %s131_s15 }
  0x27   :  { %v52_v10 = vsub.f32 %v43_v0, %v51_v8  ;;  %v55_v11 = vsub.f32 %v291_v1, %v51_v8  ;;  %v59_v12 = vsub.f32 %v293_v2, %v51_v8  ;;  %v63_v13 = vsub.f32 %v46_v5, %v51_v8  ;;  %p191_p0 = por %p190_p13, %p189_p12 }
  0x28   :  { %v74_v14 = vsel %vm70_vm0, %v73_v9, 0.0  ;;  %v83_v16 = vstv %s132_s1  ;;  %v88_v23 = vstv %s133_s16 }
  0x29   :  { %v53_v17 = vmul.f32 1.442695, %v52_v10  ;;  %v56_v18 = vmul.f32 1.442695, %v55_v11  ;;  %v60_v19 = vmul.f32 1.442695, %v59_v12  ;;  %v79_v20 = vsel %vm75_vm1, %v78_v15, %v74_v14  ;;  %p192_p1 = pnand %p191_p0, %p185_p11 }
  0x2a   :  { %v64_v21 = vmul.f32 1.442695, %v63_v13  ;;  %v84_v22 = vsel %vm80_vm2, %v83_v16, %v79_v20 }
  0x2b   :  { %140 = vpow2.f32 %v53_v17  ;;  %v89_v24 = vsel %vm85_vm3, %v88_v23, %v84_v22 }
  0x2c   :  { %142 = vpow2.f32 %v56_v18  ;;  %100 = vst [vmem:[#allocation8] sm:$0xff] %v89_v24 }
  0x2d   :  { %144 = vpow2.f32 %v60_v19 }
  0x2e   :  { %195 = shalt.err (!%p192_p1)
}
  0x2f   :  { %s196_s21 = scalar_lea.hbm %s340_s4, 128 }
  0x30   :  { %p197_p2 = scmp.ne.s32.totalorder %s340_s4, %s196_s21  ;;  %p200_p3 = scmp.lt.u32.totalorder %s196_s21, %s340_s4 }
  0x32   :  { %p202_p4 = pnand %p200_p3, %p197_p2 }
  0x34   :  { %205 = shalt.err (!%p202_p4)
}
  0x35   :  { %120 = dma.vmem_to_hbm [thread:$0]  %s118_s17, 128, %s340_s4, [#allocation9]   ;;  %146 = vpow2.f32 %v64_v21  ;;  %v141_v25 = vpop.eup %140  ;;  %v71_v32 = vsel %vm70_vm0, %v43_v0, 0.0 }
  0x36   :  { %v143_v26 = vpop.eup %142  ;;  %v76_v33 = vsel %vm75_vm1, %v291_v1, %v71_v32  ;;  %s241_s4 = smov [#allocation7]  }
  0x37   :  { %v145_v27 = vpop.eup %144  ;;  %v58_v28 = vadd.f32 %v143_v26, %v141_v25  ;;  %v81_v34 = vsel %vm80_vm2, %v293_v2, %v76_v33  ;;  %s107_s28 = sshll.u32 %s241_s4, 4  ;;  %s108_s28 = int_to_ptr.vmem [resolvable:$true] %s107_s28 }
  0x38   :  { %v86_v37 = vsel %vm85_vm3, %v46_v5, %v81_v34  ;;  %s206_s29 = scalar_lea.vmem %s108_s28, 128  ;;  %p211_p6 = scmp.lt.s32.totalorder %s108_s28, %s108_s28 }
  0x39   :  { %v62_v30 = vadd.f32 %v145_v27, %v58_v28  ;;  %p207_p5 = scmp.ne.s32.totalorder %s108_s28, %s206_s29  ;;  %p212_p7 = scmp.lt.s32.totalorder %s206_s29, %s206_s29 }
  0x3b   :  { %p213_p8 = por %p212_p7, %p211_p6 }
  0x3d   :  { %p214_p9 = pnand %p213_p8, %p207_p5 }
  0x3f   :  { %v147_v29 = vpop.eup %146 }
  0x40   :  { %v66_v31 = vadd.f32 %v147_v29, %v62_v30 }
  0x42   :  { %148 = vlog2.f32 %v66_v31 }
  0x4c   :  { %v149_v35 = vpop.eup %148 }
  0x4d   :  { %v68_v36 = vmul.f32 0.6931472, %v149_v35 }
  0x4f   :  { %v69_v38 = vadd.f32 %v68_v36, %v51_v8 }
  0x51   :  { %v90_v39 = vsub.f32 %v86_v37, %v69_v38 }
  0x53   :  { %v91_v40 = vmul.f32 1.442695, %v90_v39 }
  0x55   :  { %150 = vpow2.f32 %v91_v40 }
  0x5f   :  { %v151_v41 = vpop.eup %150 }
  0x60   :  { %v93_v42 = vsub.f32 1.0, %v151_v41 }
  0x62   :  { %v94_v43 = vmul.f32 %v93_v42, %v90_v39 }
  0x64   :  { %v95_v44 = vmul.f32 %v94_v43, %v93_v42 }
  0x66   :  { %v96_v45 = vmul.f32 %v95_v44, %v89_v24 }
  0x68   :  { %98 = vst [vmem:[#allocation7] sm:$0xff] %v96_v45 }
  0x69   :  { %217 = shalt.err (!%p214_p9)
}
  0x6a   :  { %s218_s6 = scalar_lea.hbm %s339_s3, 128 }
  0x6b   :  { %p219_p10 = scmp.ne.s32.totalorder %s339_s3, %s218_s6  ;;  %p222_p11 = scmp.lt.u32.totalorder %s218_s6, %s339_s3 }
  0x6d   :  { %p224_p12 = pnand %p222_p11, %p219_p10 }
  0x6f   :  { %227 = shalt.err (!%p224_p12)
}
  0x70   :  { %110 = dma.vmem_to_hbm [thread:$0]  %s108_s28, 128, %s339_s3, [#allocation4]  }
  0x71   :  { %232 = dma.done.wait [#allocation4], 128  }
  0x72   :  { %233 = vsyncadd [#allocation4], 4294967168 }
  0x73   :  { %234 = dma.done.wait [#allocation9], 128  }
  0x74   :  { %235 = vsyncadd [#allocation9], 4294967168 }
  0x75   :  { %127 = vsyncpa [#allocation3], 1 }
  0x76   :  { %128 = vsyncpa [#allocation4], 1 }
  0x77   :  { %129 = vsyncpa [#allocation9], 1 }
  0x78   :  { %130 = vsyncpa [#allocation5], 1 }

</bundles_post_ra>
